<compile_context>
chip_gen: v5e
topology: v5e:2x2
jax: 0.10.0
libtpu: 0.0.40
codegen_flags: <defaults>
</compile_context>

<pallas_src>
import functools

import jax
import jax.numpy as jnp
from jax import lax
from jax.experimental import pallas as pl
from jax.experimental.pallas import tpu as pltpu

# Contract K of x:[M,K] against K of w:[N,K]  ->  [M,N]  (weights stay (out,in)).
_DN = (((1,), (1,)), ((), ()))


# ------------------------------ kernels ------------------------------------


def _train_kernel_acc(x_ref, w_mu_ref, w_sig_ref, eps_in_ref, eps_out_ref,
                      b_mu_ref, b_sig_ref, o_ref, acc_mu_ref, acc_sig_ref):
    """Training forward, K reduction over the grid (nk > 1)."""
    k = pl.program_id(2)

    @pl.when(k == 0)
    def _():
        acc_mu_ref[...] = jnp.zeros_like(acc_mu_ref)
        acc_sig_ref[...] = jnp.zeros_like(acc_sig_ref)

    x = x_ref[...]                 # f32 stream (x bytes are small vs weights)
    w_mu = w_mu_ref[...]           # f32 or bf16 stream
    w_sig = w_sig_ref[...]
    cdt = w_mu.dtype
    # Elementwise noise mul in f32 (v5e VPU has no bf16 path); cast for the MXU.
    x_mu = x.astype(cdt)
    x_sig = (x * eps_in_ref[...]).astype(cdt)
    acc_mu_ref[...] += lax.dot_general(x_mu, w_mu, _DN,
                                       preferred_element_type=jnp.float32)
    acc_sig_ref[...] += lax.dot_general(x_sig, w_sig, _DN,
                                        preferred_element_type=jnp.float32)

    # eps_out scale + bias are K-invariant: applied once in the finalize step.
    @pl.when(k == pl.num_programs(2) - 1)
    def _():
        eps_out = eps_out_ref[...]
        bias = b_mu_ref[...] + b_sig_ref[...] * eps_out
        o_ref[...] = (acc_mu_ref[...] + acc_sig_ref[...] * eps_out
                      + bias).astype(o_ref.dtype)


def _train_kernel_direct(x_ref, w_mu_ref, w_sig_ref, eps_in_ref, eps_out_ref,
                         b_mu_ref, b_sig_ref, o_ref):
    """Training forward, single K tile: no accumulator scratch, direct store."""
    x = x_ref[...]
    w_mu = w_mu_ref[...]
    w_sig = w_sig_ref[...]
    cdt = w_mu.dtype
    x_mu = x.astype(cdt)
    x_sig = (x * eps_in_ref[...]).astype(cdt)
    mu = lax.dot_general(x_mu, w_mu, _DN, preferred_element_type=jnp.float32)
    sig = lax.dot_general(x_sig, w_sig, _DN, preferred_element_type=jnp.float32)
    eps_out = eps_out_ref[...]
    bias = b_mu_ref[...] + b_sig_ref[...] * eps_out
    o_ref[...] = (mu + sig * eps_out + bias).astype(o_ref.dtype)


def _eval_kernel_acc(x_ref, w_mu_ref, b_mu_ref, o_ref, acc_ref):
    """Eval forward, K reduction over the grid (nk > 1)."""
    k = pl.program_id(2)

    @pl.when(k == 0)
    def _():
        acc_ref[...] = jnp.zeros_like(acc_ref)

    w_mu = w_mu_ref[...]
    acc_ref[...] += lax.dot_general(x_ref[...].astype(w_mu.dtype), w_mu, _DN,
                                    preferred_element_type=jnp.float32)

    @pl.when(k == pl.num_programs(2) - 1)
    def _():
        o_ref[...] = (acc_ref[...] + b_mu_ref[...]).astype(o_ref.dtype)


def _eval_kernel_direct(x_ref, w_mu_ref, b_mu_ref, o_ref):
    """Eval forward, single K tile."""
    w_mu = w_mu_ref[...]
    out = lax.dot_general(x_ref[...].astype(w_mu.dtype), w_mu, _DN,
                          preferred_element_type=jnp.float32)
    o_ref[...] = (out + b_mu_ref[...]).astype(o_ref.dtype)


# --------------------------- tiling / VMEM budget ----------------------------


def _round_up(x, m):
    return ((x + m - 1) // m) * m


def _tile_eff(t):
    # Measured fraction of HBM roofline vs DMA block width (flat above ~512).
    if t >= 640:
        return 0.86
    if t >= 512:
        return 0.85
    if t >= 384:
        return 0.75
    if t >= 256:
        return 0.63
    return 0.29


def _pick_tile(dim, cap):
    """Return (tile, padded_dim).

    tile is a multiple of 128, <= cap; padded_dim is a multiple of tile.
    Minimizes streamed_bytes / bandwidth_efficiency(tile), so awkward dims get
    a big tile plus a little zero padding instead of collapsing to 128.
    """
    cap = max(128, (int(cap) // 128) * 128)
    base = _round_up(int(dim), 128)
    if base <= cap:
        return base, base
    best_t, best_p, best_score = 128, _round_up(base, 128), None
    for t in range(128, cap + 1, 128):
        padded = _round_up(base, t)
        score = padded / _tile_eff(t)
        if (best_score is None or score < best_score
                or (score == best_score and t > best_t)):
            best_t, best_p, best_score = t, padded, score
    return best_t, best_p


@functools.lru_cache(maxsize=None)
def _device_vmem_capacity_bytes():
    try:
        cap = getattr(pltpu.get_tpu_info(), "vmem_capacity_bytes", None)
        if cap:
            return int(cap)
    except Exception:
        pass
    return 64 << 20  # conservative fallback: v7x per-TensorCore VMEM


def _vmem_limit_bytes(tm, tn, tk, n_weight_tiles, w_bytes, n_k_vecs, n_n_vecs,
                      n_acc, out_bytes):
    # Per-grid-step operand footprint (double buffered by the pipeline) +
    # persistent f32 accumulators + headroom for Mosaic internal scratch.
    # (1, t) vector blocks counted at 8 sublanes (VMEM sublane padding).
    step = (tm * tk * 4                              # x tile (f32 stream)
            + n_weight_tiles * tn * tk * w_bytes     # weight tile(s)
            + n_k_vecs * 8 * tk * 4
            + n_n_vecs * 8 * tn * 4
            + tm * tn * out_bytes)                   # output tile
    total = 2 * step + n_acc * tm * tn * 4 + (4 << 20)
    cap = int(0.55 * _device_vmem_capacity_bytes())
    return int(min(max(total, 8 << 20), cap))


# --------------------------- call construction -------------------------------


@functools.lru_cache(maxsize=None)
def _build_call(training, b_p, in_p, out_p, tm, tn, tk, w_dtype_name,
                out_dtype_name):
    nm, nn, nk = b_p // tm, out_p // tn, in_p // tk
    w_bytes = jnp.dtype(w_dtype_name).itemsize
    out_dtype = jnp.dtype(out_dtype_name)

    x_spec = pl.BlockSpec((tm, tk), lambda m, n, k: (m, k))
    w_spec = pl.BlockSpec((tn, tk), lambda m, n, k: (n, k))
    vk_spec = pl.BlockSpec((1, tk), lambda m, n, k: (0, k))
    vn_spec = pl.BlockSpec((1, tn), lambda m, n, k: (0, n))
    o_spec = pl.BlockSpec((tm, tn), lambda m, n, k: (m, n))

    if training:
        in_specs = [x_spec, w_spec, w_spec, vk_spec, vn_spec, vn_spec, vn_spec]
        n_w, n_vk, n_vn = 2, 1, 3
        if nk > 1:
            kernel = _train_kernel_acc
            scratch = [pltpu.VMEM((tm, tn), jnp.float32),
                       pltpu.VMEM((tm, tn), jnp.float32)]
        else:
            kernel = _train_kernel_direct
            scratch = []
    else:
        in_specs = [x_spec, w_spec, vn_spec]
        n_w, n_vk, n_vn = 1, 0, 1
        if nk > 1:
            kernel = _eval_kernel_acc
            scratch = [pltpu.VMEM((tm, tn), jnp.float32)]
        else:
            kernel = _eval_kernel_direct
            scratch = []

    return pl.pallas_call(
        kernel,
        out_shape=jax.ShapeDtypeStruct((b_p, out_p), out_dtype),
        grid_spec=pltpu.PrefetchScalarGridSpec(
            num_scalar_prefetch=0,
            grid=(nm, nn, nk),   # M, N "parallel"; K reduction last
            in_specs=in_specs,
            out_specs=o_spec,
            scratch_shapes=scratch,
        ),
        compiler_params=pltpu.CompilerParams(
            dimension_semantics=("parallel", "parallel", "arbitrary"),
            vmem_limit_bytes=_vmem_limit_bytes(
                tm, tn, tk, n_w, w_bytes, n_vk, n_vn, len(scratch),
                out_dtype.itemsize),
        ),
    )


# -------------------------------- wrapper ------------------------------------


def noisy_linear_forward(x, params, training=True, *,
                         compute_dtype=jnp.float32,
                         tm_max=256, tn_max=512, tk_max=1024,
                         ensure_two_n_blocks=True):
    """NoisyLinear forward. x: [B, in_features] -> [B, out_features].

    compute_dtype: dtype the (large) weight matrices are streamed in / MXU
      operand dtype. jnp.bfloat16 halves weight HBM bytes (~2x on the
      mem-bound train path) while bias / eps / accumulator / output stay f32.
    ensure_two_n_blocks: keep >= 2 blocks on the N grid axis so the "parallel"
      axis can shard across v7x's two TensorCores (near-neutral on v5e/v6e).
    """
    w_mu = params["weight_mu"]
    b, in_f = x.shape
    out_f = w_mu.shape[0]
    out_dtype = jnp.dtype(x.dtype)
    w_dt = jnp.dtype(compute_dtype)

    # --- tile / padding selection -------------------------------------------
    tk, in_p = _pick_tile(in_f, tk_max)
    tn, out_p = _pick_tile(out_f, tn_max)
    if ensure_two_n_blocks and out_p // tn < 2 and out_p >= 256:
        tn, out_p = _pick_tile(out_f, out_p // 2)
    b8 = _round_up(b, 8)
    if b8 <= tm_max:
        tm, b_p = b8, b8
    else:
        tm = _round_up(tm_max, 8)
        b_p = _round_up(b, tm)

    def pad2(a, rows, cols, dt=None):
        if dt is not None and a.dtype != dt:
            a = a.astype(dt)
        return jnp.pad(a, ((0, rows - a.shape[0]), (0, cols - a.shape[1])))

    x_pd = pad2(x, b_p, in_p, jnp.float32)
    w_mu_pd = pad2(w_mu, out_p, in_p, w_dt)
    b_mu_pd = pad2(params["bias_mu"].reshape(1, out_f), 1, out_p, jnp.float32)

    if training:
        w_sig_pd = pad2(params["weight_sigma"], out_p, in_p, w_dt)
        eps_in_pd = pad2(params["epsilon_in"].reshape(1, in_f), 1, in_p,
                         jnp.float32)
        eps_out_pd = pad2(params["epsilon_out"].reshape(1, out_f), 1, out_p,
                          jnp.float32)
        b_sig_pd = pad2(params["bias_sigma"].reshape(1, out_f), 1, out_p,
                        jnp.float32)
        call = _build_call(True, b_p, in_p, out_p, tm, tn, tk,
                           w_dt.name, out_dtype.name)
        out = call(x_pd, w_mu_pd, w_sig_pd, eps_in_pd, eps_out_pd,
                   b_mu_pd, b_sig_pd)
    else:
        call = _build_call(False, b_p, in_p, out_p, tm, tn, tk,
                           w_dt.name, out_dtype.name)
        out = call(x_pd, w_mu_pd, b_mu_pd)

    return out[:b, :out_f]


# -------------------- parameter / noise construction -------------------------


def _scale_noise(key, size):
    # torch: x = randn(size); return x.sign() * x.abs().sqrt()
    x = jax.random.normal(key, (size,), dtype=jnp.float32)
    return jnp.sign(x) * jnp.sqrt(jnp.abs(x))


def init_noisy_linear(key, in_features, out_features, std_init=0.1):
    k_wmu, k_bmu, k_ein, k_eout = jax.random.split(key, 4)
    mu_range = 1.0 / jnp.sqrt(float(in_features))

    weight_mu = jax.random.uniform(
        k_wmu, (out_features, in_features), jnp.float32, -mu_range, mu_range)
    weight_sigma = jnp.full((out_features, in_features),
                            std_init / jnp.sqrt(float(in_features)), jnp.float32)
    bias_mu = jax.random.uniform(
        k_bmu, (out_features,), jnp.float32, -mu_range, mu_range)
    bias_sigma = jnp.full((out_features,),
                          std_init / jnp.sqrt(float(out_features)), jnp.float32)

    # reset_noise(): factorized Gaussian noise
    eps_in = _scale_noise(k_ein, in_features)
    eps_out = _scale_noise(k_eout, out_features)

    return {
        "weight_mu": weight_mu,
        "weight_sigma": weight_sigma,
        "bias_mu": bias_mu,
        "bias_sigma": bias_sigma,
        "epsilon_in": eps_in,
        "epsilon_out": eps_out,
        # Dense buffers kept only for parity with the PyTorch module's
        # registered buffers / reference checks; the kernel never reads them.
        "weight_epsilon": jnp.outer(eps_out, eps_in),
        "bias_epsilon": eps_out,
    }


# ---------------------------------- demo -------------------------------------


if __name__ == "__main__":
    key = jax.random.PRNGKey(0)
    k_p1, k_x1, k_p2, k_x2, k_p3, k_x3 = jax.random.split(key, 6)

    # Case 1: f32, multi-tile grid on all three axes (M, N, K), K padding
    # (in=320 pads to 384 with tk=128), dual f32 accumulators.
    b1, in1, out1 = 16, 320, 384
    p1 = init_noisy_linear(k_p1, in1, out1, std_init=0.1)
    x1 = jax.random.normal(k_x1, (b1, in1), dtype=jnp.float32)
    o1 = noisy_linear_forward(x1, p1, training=True,
                              tm_max=8, tn_max=128, tk_max=128)
    jax.block_until_ready(o1)
    w1 = p1["weight_mu"] + p1["weight_sigma"] * p1["weight_epsilon"]
    bb1 = p1["bias_mu"] + p1["bias_sigma"] * p1["bias_epsilon"]
    r1 = x1 @ w1.T + bb1
    assert jnp.allclose(o1, r1, atol=1e-4, rtol=1e-4), "case1 train mismatch"

    # Case 1b: eval path, default tile caps (single-K direct kernel, N split
    # into >=2 blocks so v7x can use both TensorCores).
    o1e = noisy_linear_forward(x1, p1, training=False)
    jax.block_until_ready(o1e)
    r1e = x1 @ p1["weight_mu"].T + p1["bias_mu"]
    assert jnp.allclose(o1e, r1e, atol=1e-4, rtol=1e-4), "case1 eval mismatch"

    # Case 2: ragged, non (8,128)-aligned shapes -> padding path, single K/N
    # tile, no accumulator scratch.
    b2, in2, out2 = 5, 96, 80
    p2 = init_noisy_linear(k_p2, in2, out2, std_init=0.1)
    x2 = jax.random.normal(k_x2, (b2, in2), dtype=jnp.float32)
    o2 = noisy_linear_forward(x2, p2, training=True)
    jax.block_until_ready(o2)
    w2 = p2["weight_mu"] + p2["weight_sigma"] * p2["weight_epsilon"]
    bb2 = p2["bias_mu"] + p2["bias_sigma"] * p2["bias_epsilon"]
    r2 = x2 @ w2.T + bb2
    assert jnp.allclose(o2, r2, atol=1e-4, rtol=1e-4), "case2 mismatch"

    # Case 3: bf16 weight streaming with f32 accumulation, multi-K grid.
    b3, in3, out3 = 8, 256, 256
    p3 = init_noisy_linear(k_p3, in3, out3, std_init=0.1)
    x3 = jax.random.normal(k_x3, (b3, in3), dtype=jnp.float32)
    o3 = noisy_linear_forward(x3, p3, training=True,
                              compute_dtype=jnp.bfloat16, tk_max=128)
    jax.block_until_ready(o3)
    w3 = p3["weight_mu"] + p3["weight_sigma"] * p3["weight_epsilon"]
    bb3 = p3["bias_mu"] + p3["bias_sigma"] * p3["bias_epsilon"]
    r3 = x3 @ w3.T + bb3
    assert jnp.allclose(o3, r3, atol=5e-2, rtol=5e-2), "case3 bf16 mismatch"

    print("KERNEL_OK")
</pallas_src>

<mosaic_0001>
module attributes {stable_mosaic.version = 11 : i64} {
  func.func @_train_kernel_acc(%arg0: i32, %arg1: i32, %arg2: i32, %arg3: memref<8x128xf32, #tpu.memory_space<vmem>>, %arg4: memref<128x128xf32, #tpu.memory_space<vmem>>, %arg5: memref<128x128xf32, #tpu.memory_space<vmem>>, %arg6: memref<1x128xf32, #tpu.memory_space<vmem>>, %arg7: memref<1x128xf32, #tpu.memory_space<vmem>>, %arg8: memref<1x128xf32, #tpu.memory_space<vmem>>, %arg9: memref<1x128xf32, #tpu.memory_space<vmem>>, %arg10: memref<8x128xf32, #tpu.memory_space<vmem>>, %arg11: memref<8x128xf32, #tpu.memory_space<vmem>>, %arg12: memref<8x128xf32, #tpu.memory_space<vmem>>) attributes {dimension_semantics = [#tpu.dimension_semantics<parallel>, #tpu.dimension_semantics<parallel>, #tpu.dimension_semantics<arbitrary>], iteration_bounds = array<i64: 2, 3, 3>, scalar_prefetch = 0 : i64, scratch_operands = 2 : i64, tpu.core_type = #tpu.core_type<tc>, window_params = [{transform_indices = @transform_0, window_bounds = array<i64: 8, 128>}, {transform_indices = @transform_1, window_bounds = array<i64: 128, 128>}, {transform_indices = @transform_2, window_bounds = array<i64: 128, 128>}, {transform_indices = @transform_3, window_bounds = array<i64: 1, 128>}, {transform_indices = @transform_4, window_bounds = array<i64: 1, 128>}, {transform_indices = @transform_5, window_bounds = array<i64: 1, 128>}, {transform_indices = @transform_6, window_bounds = array<i64: 1, 128>}, {transform_indices = @transform_7, window_bounds = array<i64: 8, 128>}]} {
    %c0_i32 = arith.constant 0 : i32
    %0 = arith.cmpi eq, %arg2, %c0_i32 : i32
    %1 = arith.extui %0 : i1 to i32
    %c0_i32_0 = arith.constant 0 : i32
    %2 = arith.cmpi ne, %1, %c0_i32_0 : i32
    scf.if %2 {
      %cst_18 = arith.constant 0.000000e+00 : f32
      %20 = vector.broadcast %cst_18 : f32 to vector<8x128xf32>
      %c0_19 = arith.constant 0 : index
      %c0_20 = arith.constant 0 : index
      %21 = vector.load %arg11[%c0_19, %c0_20] : memref<8x128xf32, #tpu.memory_space<vmem>>, vector<8x128xf32>
      tpu.vector_store %arg11[%c0_19, %c0_20], %20 {strides = array<i32>} : memref<8x128xf32, #tpu.memory_space<vmem>>, vector<8x128xf32>,
      %cst_21 = arith.constant 0.000000e+00 : f32
      %22 = vector.broadcast %cst_21 : f32 to vector<8x128xf32>
      %c0_22 = arith.constant 0 : index
      %c0_23 = arith.constant 0 : index
      %23 = vector.load %arg12[%c0_22, %c0_23] : memref<8x128xf32, #tpu.memory_space<vmem>>, vector<8x128xf32>
      tpu.vector_store %arg12[%c0_22, %c0_23], %22 {strides = array<i32>} : memref<8x128xf32, #tpu.memory_space<vmem>>, vector<8x128xf32>,
    } else {
    }
    %c0 = arith.constant 0 : index
    %c0_1 = arith.constant 0 : index
    %3 = vector.load %arg3[%c0, %c0_1] : memref<8x128xf32, #tpu.memory_space<vmem>>, vector<8x128xf32>
    %c0_2 = arith.constant 0 : index
    %c0_3 = arith.constant 0 : index
    %4 = vector.load %arg4[%c0_2, %c0_3] : memref<128x128xf32, #tpu.memory_space<vmem>>, vector<128x128xf32>
    %c0_4 = arith.constant 0 : index
    %c0_5 = arith.constant 0 : index
    %5 = vector.load %arg5[%c0_4, %c0_5] : memref<128x128xf32, #tpu.memory_space<vmem>>, vector<128x128xf32>
    %c0_6 = arith.constant 0 : index
    %c0_7 = arith.constant 0 : index
    %6 = vector.load %arg6[%c0_6, %c0_7] : memref<1x128xf32, #tpu.memory_space<vmem>>, vector<1x128xf32>
    %7 = vector.broadcast %6 : vector<1x128xf32> to vector<8x128xf32>
    %8 = arith.mulf %3, %7 : vector<8x128xf32>
    %c0_8 = arith.constant 0 : index
    %c0_9 = arith.constant 0 : index
    %9 = vector.load %arg11[%c0_8, %c0_9] : memref<8x128xf32, #tpu.memory_space<vmem>>, vector<8x128xf32>
    %cst = arith.constant dense<0.000000e+00> : vector<8x128xf32>
    %10 = tpu.matmul %3, %4, %cst {dimension_numbers = #tpu.dot_dimension_numbers<[1], [1], [0], [0], [0, 0, 1, 0], [], []>} : vector<8x128xf32>, vector<128x128xf32>, vector<8x128xf32> -> vector<8x128xf32>
    %11 = arith.addf %9, %10 : vector<8x128xf32>
    %c0_10 = arith.constant 0 : index
    %c0_11 = arith.constant 0 : index
    %12 = vector.load %arg11[%c0_10, %c0_11] : memref<8x128xf32, #tpu.memory_space<vmem>>, vector<8x128xf32>
    tpu.vector_store %arg11[%c0_10, %c0_11], %11 {strides = array<i32>} : memref<8x128xf32, #tpu.memory_space<vmem>>, vector<8x128xf32>,
    %c0_12 = arith.constant 0 : index
    %c0_13 = arith.constant 0 : index
    %13 = vector.load %arg12[%c0_12, %c0_13] : memref<8x128xf32, #tpu.memory_space<vmem>>, vector<8x128xf32>
    %cst_14 = arith.constant dense<0.000000e+00> : vector<8x128xf32>
    %14 = tpu.matmul %8, %5, %cst_14 {dimension_numbers = #tpu.dot_dimension_numbers<[1], [1], [0], [0], [0, 0, 1, 0], [], []>} : vector<8x128xf32>, vector<128x128xf32>, vector<8x128xf32> -> vector<8x128xf32>
    %15 = arith.addf %13, %14 : vector<8x128xf32>
    %c0_15 = arith.constant 0 : index
    %c0_16 = arith.constant 0 : index
    %16 = vector.load %arg12[%c0_15, %c0_16] : memref<8x128xf32, #tpu.memory_space<vmem>>, vector<8x128xf32>
    tpu.vector_store %arg12[%c0_15, %c0_16], %15 {strides = array<i32>} : memref<8x128xf32, #tpu.memory_space<vmem>>, vector<8x128xf32>,
    %c2_i32 = arith.constant 2 : i32
    %17 = arith.cmpi eq, %arg2, %c2_i32 : i32
    %18 = arith.extui %17 : i1 to i32
    %c0_i32_17 = arith.constant 0 : i32
    %19 = arith.cmpi ne, %18, %c0_i32_17 : i32
    scf.if %19 {
      %c0_18 = arith.constant 0 : index
      %c0_19 = arith.constant 0 : index
      %20 = vector.load %arg7[%c0_18, %c0_19] : memref<1x128xf32, #tpu.memory_space<vmem>>, vector<1x128xf32>
      %c0_20 = arith.constant 0 : index
      %c0_21 = arith.constant 0 : index
      %21 = vector.load %arg8[%c0_20, %c0_21] : memref<1x128xf32, #tpu.memory_space<vmem>>, vector<1x128xf32>
      %c0_22 = arith.constant 0 : index
      %c0_23 = arith.constant 0 : index
      %22 = vector.load %arg9[%c0_22, %c0_23] : memref<1x128xf32, #tpu.memory_space<vmem>>, vector<1x128xf32>
      %23 = arith.mulf %22, %20 : vector<1x128xf32>
      %24 = arith.addf %21, %23 : vector<1x128xf32>
      %c0_24 = arith.constant 0 : index
      %c0_25 = arith.constant 0 : index
      %25 = vector.load %arg11[%c0_24, %c0_25] : memref<8x128xf32, #tpu.memory_space<vmem>>, vector<8x128xf32>
      %c0_26 = arith.constant 0 : index
      %c0_27 = arith.constant 0 : index
      %26 = vector.load %arg12[%c0_26, %c0_27] : memref<8x128xf32, #tpu.memory_space<vmem>>, vector<8x128xf32>
      %27 = vector.broadcast %20 : vector<1x128xf32> to vector<8x128xf32>
      %28 = arith.mulf %26, %27 : vector<8x128xf32>
      %29 = arith.addf %25, %28 : vector<8x128xf32>
      %30 = vector.broadcast %24 : vector<1x128xf32> to vector<8x128xf32>
      %31 = arith.addf %29, %30 : vector<8x128xf32>
      %c0_28 = arith.constant 0 : index
      %c0_29 = arith.constant 0 : index
      %32 = vector.load %arg10[%c0_28, %c0_29] : memref<8x128xf32, #tpu.memory_space<vmem>>, vector<8x128xf32>
      tpu.vector_store %arg10[%c0_28, %c0_29], %31 {strides = array<i32>} : memref<8x128xf32, #tpu.memory_space<vmem>>, vector<8x128xf32>,
    } else {
    }
    return
  }
  func.func @transform_0(%arg0: i32, %arg1: i32, %arg2: i32) -> (i32, i32) {
    %c0_i32 = arith.constant 0 : i32
    return %arg0, %arg2 : i32, i32
  }
  func.func @transform_1(%arg0: i32, %arg1: i32, %arg2: i32) -> (i32, i32) {
    %c0_i32 = arith.constant 0 : i32
    return %arg1, %arg2 : i32, i32
  }
  func.func @transform_2(%arg0: i32, %arg1: i32, %arg2: i32) -> (i32, i32) {
    %c0_i32 = arith.constant 0 : i32
    return %arg1, %arg2 : i32, i32
  }
  func.func @transform_3(%arg0: i32, %arg1: i32, %arg2: i32) -> (i32, i32) {
    %c0_i32 = arith.constant 0 : i32
    %c0_i32_0 = arith.constant 0 : i32
    return %c0_i32, %arg2 : i32, i32
  }
  func.func @transform_4(%arg0: i32, %arg1: i32, %arg2: i32) -> (i32, i32) {
    %c0_i32 = arith.constant 0 : i32
    %c0_i32_0 = arith.constant 0 : i32
    return %c0_i32, %arg1 : i32, i32
  }
  func.func @transform_5(%arg0: i32, %arg1: i32, %arg2: i32) -> (i32, i32) {
    %c0_i32 = arith.constant 0 : i32
    %c0_i32_0 = arith.constant 0 : i32
    return %c0_i32, %arg1 : i32, i32
  }
  func.func @transform_6(%arg0: i32, %arg1: i32, %arg2: i32) -> (i32, i32) {
    %c0_i32 = arith.constant 0 : i32
    %c0_i32_0 = arith.constant 0 : i32
    return %c0_i32, %arg1 : i32, i32
  }
  func.func @transform_7(%arg0: i32, %arg1: i32, %arg2: i32) -> (i32, i32) {
    %c0_i32 = arith.constant 0 : i32
    return %arg0, %arg1 : i32, i32
  }
}

</mosaic_0001>

<bundles_post_ra>
// kernel: tpu_custom_call.1
= control target key start
LH: loop header
LB: loop body
LE: loop exit
PB: predicated region body
PF: predicated region fallthrough
CT: control target
= control target key end

     0   :  { %s2088_s0 = inlined_call_operand.hbm [shape: f32[16,384], index: 0, kind: input, shape index: {}]   ;;  %s2089_s1 = inlined_call_operand.hbm [shape: f32[384,384], index: 1, kind: input, shape index: {}]   ;;  %s2090_s2 = inlined_call_operand.hbm [shape: f32[384,384], index: 2, kind: input, shape index: {}]   ;;  %s2091_s3 = inlined_call_operand.hbm [shape: f32[1,384], index: 3, kind: input, shape index: {}]   ;;  %s2092_s4 = inlined_call_operand.vmem [shape: f32[1,384], index: 4, kind: input, shape index: {}]   ;;  %s2093_s5 = inlined_call_operand.hbm [shape: f32[1,384], index: 5, kind: input, shape index: {}]   ;;  %s2094_s6 = inlined_call_operand.hbm [shape: f32[1,384], index: 6, kind: input, shape index: {}]   ;;  %s2095_s7 = inlined_call_operand.hbm [shape: f32[16,384], index: 7, kind: output, shape index: {}]  }
   0x1   :  { %2128 = sst [smem:[#allocation49_spill]] %s2088_s0 }
   0x2   :  { %2129 = sst [smem:[#allocation50_spill]] %s2089_s1 }
   0x3   :  { %2130 = sst [smem:[#allocation51_spill]] %s2090_s2 }
   0x4   :  { %2131 = sst [smem:[#allocation52_spill]] %s2091_s3 }
   0x5   :  { %2132 = sst [smem:[#allocation53_spill]] %s2092_s4 }
   0x6   :  { %2133 = sst [smem:[#allocation54_spill]] %s2093_s5 }
   0x7   :  { %2134 = sst [smem:[#allocation55_spill]] %s2094_s6 }
   0x8   :  { %2135 = sst [smem:[#allocation56_spill]] %s2095_s7 }
   0x9   :  { %12 = vsyncpa [#allocation5], 0 }
   0xa   :  { %14 = vsyncpa [#allocation5 + $0x1], 0 }
   0xb   :  { %15 = vsyncpa [#allocation8], 0 }
   0xc   :  { %17 = vsyncpa [#allocation8 + $0x1], 0 }
   0xd   :  { %18 = vsyncpa [#allocation11], 0 }
   0xe   :  { %20 = vsyncpa [#allocation11 + $0x1], 0 }
   0xf   :  { %21 = vsyncpa [#allocation14], 0 }
  0x10   :  { %23 = vsyncpa [#allocation14 + $0x1], 0 }
  0x11   :  { %24 = vsyncpa [#allocation6], 0 }
  0x12   :  { %26 = vsyncpa [#allocation6 + $0x1], 0  ;;  %s1560_s24 = smov 0   ;;  %s1562_s25 = smov 0  }
  0x13   :  { %s1564_s26 = smov 0   ;;  %s1566_s27 = smov 0  }
  0x14   :  { %s1568_s28 = smov 0   ;;  %s1570_s29 = smov 0  }
  0x15   :  { %s1572_s30 = smov 0   ;;  %s1574_s8 = smov 0  }
  0x16   :  { %s1576_s9 = smov 0   ;;  %s1578_s10 = smov 0  }
  0x17   :  { %s1580_s11 = smov 0   ;;  %s1582_s12 = smov 0  }
  0x18   :  { %s1584_s13 = smov 0   ;;  %s1586_s14 = smov 0  }
  0x19   :  { %s1588_s15 = smov 0   ;;  %s1590_s16 = smov 0  }
  0x1a   :  { %s1592_s17 = smov 0   ;;  %s1594_s18 = smov 0  }
  0x1b   :  { %s1596_s19 = smov 0   ;;  %s1598_s20 = smov 0  }
  0x1c   :  { %s1600_s21 = smov 0   ;;  %s1602_s22 = smov 0  }
  0x1d LB: > { %2136 = sst [smem:[#allocation22_spill]] %s1430_s24  ;;  %p2113_p0 = scmp.eq.s32.totalorder %s1514_s22, 0  ;;  %s1514_s22 = sphi %s1602_s22, %s32_s22   ;;  %s1510_s21 = sphi %s1600_s21, %s2235_s21   ;;  %s1506_s20 = sphi %s1598_s20, %s2242_s20   ;;  %s1502_s19 = sphi %s1596_s19, %s2241_s19   ;;  %s1498_s18 = sphi %s1594_s18, %s2232_s18   ;;  %s1494_s17 = sphi %s1592_s17, %s2240_s17   ;;  %s1490_s16 = sphi %s1590_s16, %s2239_s16   ;;  %s1486_s15 = sphi %s1588_s15, %s2231_s15   ;;  %s1482_s14 = sphi %s1586_s14, %s2238_s14   ;;  %s1478_s13 = sphi %s1584_s13, %s2237_s13   ;;  %s1474_s12 = sphi %s1582_s12, %s2229_s12   ;;  %s1470_s11 = sphi %s1580_s11, %s2228_s11   ;;  %s1466_s10 = sphi %s1578_s10, %s2227_s10   ;;  %s1462_s9 = sphi %s1576_s9, %s2226_s9   ;;  %s1458_s8 = sphi %s1574_s8, %s2225_s8   ;;  %s1454_s30 = sphi %s1572_s30, %s2224_s30   ;;  %s1450_s29 = sphi %s1570_s29, %s2236_s29   ;;  %s1446_s28 = sphi %s1568_s28, %s2223_s28   ;;  %s1442_s27 = sphi %s1566_s27, %s2222_s27   ;;  %s1438_s26 = sphi %s1564_s26, %s2221_s26   ;;  %s1434_s25 = sphi %s1562_s25, %s2220_s25   ;;  %s1430_s24 = sphi %s1560_s24, %s2219_s24  }
  0x1e   : > { %2137 = sst [smem:[#allocation23_spill]] %s1434_s25  ;;  %p95_p1 = scmp.ne.s32.totalorder %s1474_s12, %s1470_s11 }
  0x1f   : > { %2138 = sst [smem:[#allocation24_spill]] %s1438_s26  ;;  %p101_p2 = scmp.ne.s32.totalorder %s1470_s11, %s1466_s10 }
  0x20   : > { %2139 = sst [smem:[#allocation25_spill]] %s1442_s27  ;;  %p2114_p3 = scmp.lt.s32.totalorder %s1514_s22, 18 }
  0x21   : > { %2140 = sst [smem:[#allocation26_spill]] %s1446_s28  ;;  %p97_p4 = por %p95_p1, %p2113_p0 }
  0x22   : > { %2141 = sst [smem:[#allocation27_spill]] %s1450_s29  ;;  %s884_s4 = smul.u32 48, %s1506_s20 }
  0x23   : > { %2142 = sst [smem:[#allocation28_spill]] %s1458_s8  ;;  %p1684_p5 = pnand %p2114_p3, %p97_p4 }
  0x24   : > { %2143 = sst [smem:[#allocation29_spill]] %s1462_s9  ;;  %s315_s6 = sadd.s32 %s1502_s19, %s884_s4 }
  0x25   : > { %2144 = sst [smem:[#allocation30_spill]] %s1470_s11  ;;  %s867_s23 = sshll.u32 %s315_s6, 3 }
  0x26   : > { %2145 = sst [smem:[#allocation31_spill]] %s1474_s12  ;;  %s2102_s25 = smov 384  }
  0x27   : > { %2146 = sst [smem:[#allocation32_spill]] %s1486_s15  ;;  %s2103_s4 = smov 128  }
  0x28   : > { %2147 = sst [smem:[#allocation33_spill]] %s1490_s16  ;;  %p872_p6 = scmp.ge.s32.totalorder %s1514_s22, 1 }
  0x29   : > { %2148 = sst [smem:[#allocation34_spill]] %s1494_s17  ;;  %p409_p7 = scmp.lt.s32.totalorder %s1514_s22, 19 }
  0x2a   : > { %2149 = sst [smem:[#allocation35_spill]] %s1498_s18  ;;  %s308_s18 = sand.u32 1, %s1474_s12  }
  0x2b   : > { %2150 = sst [smem:[#allocation36_spill]] %s1510_s21  ;;  %s864_s16 = sshll.u32 %s308_s18, 7 }
  0x2c   : > { %s310_s5 = scalar_lea.vmem [#allocation7], %s864_s16  ;;  %s2152_s1 = sld [smem:[#allocation50_spill]] }
  0x2d   : > { %s320_s0 = sshll.u32 %s310_s5, 4  ;;  %s2153_s18 = sand.u32 1, %s1514_s22   ;;  %s321_s0 = int_to_ptr.vmem [resolvable:$true] %s320_s0 }
  0x2e   : > { %s1694_s24 = scalar_lea.sflag [#allocation8], %s2153_s18  ;;  %s2104_s5 = smov 8  }
  0x2f   : > { %s2154_s2 = sld [smem:[#allocation51_spill]]  ;;  %s334_s28 = scalar_lea.vmem [#allocation9], %s864_s16 }
  0x30   : > { %s1705_s18 = sshll.u32 %s334_s28, 4  ;;  %p1712_p8 = pnand %p872_p6, %p409_p7 }
  0x31   : > { %2155 = sst [smem:[#allocation37_spill]] %s1705_s18  ;;  %s44_s16 = sadd.s32 1, %s1502_s19 }
  0x32   : > { %s317_s7 = scalar_lea.hbm %s2152_s1, %s867_s23  ;;  %p1720_p9 = scmp.ge.s32.totalorder %s44_s16, 3 }
  0x33   : > { %s318_s29 = sshll.u32 %s317_s7, 4  ;;  %s142_s6 = sadd.s32 1, %s1462_s9  ;;  %s319_s29 = int_to_ptr.hbm [resolvable:$true] %s318_s29 }
  0x34   : > { %907 = dma.hbm_to_vmem [thread:$0]  (!%p1684_p5), %s319_s29, 2048, %s321_s0, %s1694_s24, %s2102_s25, %s2103_s4, %s2104_s5  }
  0x35   : > { %s341_s27 = scalar_lea.hbm %s2154_s2, %s867_s23  ;;  %s1717_s29 = sadd.s32 4294967295, %s1514_s22  }
  0x36   : > { %s342_s1 = sshll.u32 %s341_s27, 4  ;;  %p2112_p10 = scmp.eq.s32.totalorder %s1717_s29, 0  ;;  %s1708_s1 = int_to_ptr.hbm [resolvable:$true] %s342_s1 }
  0x37   : > { %p149_p11 = scmp.ne.s32.totalorder %s1462_s9, %s1458_s8  ;;  %s2244_s16 = smov (%p1720_p9, %s44_s16), 0 }
  0x38   : > { %2158 = sst [smem:[#allocation38_spill]] %s2244_s16  ;;  %p1737_p12 = por %p101_p2, %p2112_p10 }
  0x39   : > { %p1743_p13 = por %p149_p11, %p2113_p0  ;;  %s1749_s28 = ssub.s32 %s1502_s19, %s2244_s16 }
  0x3a   : > { %s2159_s7 = scalar_select %p1737_p12, 1, 0 }
  0x3b   : > { %p155_p1 = scmp.ne.s32.totalorder %s1458_s8, %s1454_s30  ;;  %p140_p4 = scmp.eq.s32.totalorder %s1749_s28, 0 }
  0x3c   : > { %2160 = sst [smem:[#allocation39_spill]] %s2159_s7  ;;  %p259_p6 = scmp.eq.s32.totalorder %s1717_s29, 17 }
  0x3d   : > { %p1757_p2 = por %p155_p1, %p2112_p10  ;;  %s356_s4 = sand.u32 1, %s1462_s9  }
  0x3e   : > { %s1762_s25 = scalar_select %p140_p4, %s1462_s9, %s142_s6  }
  0x3f   : > { %s2162_s10 = scalar_select %p1757_p2, 1, 0 }
  0x40   : > { %2164 = sst [smem:[#allocation41_spill]] %s1762_s25  ;;  %s357_s16 = scalar_lea.vmem [#allocation10], %s356_s4 }
  0x41   : > { %2163 = sst [smem:[#allocation40_spill]] %s2162_s10  ;;  %s364_s8 = sshll.u32 %s357_s16, 4  ;;  %s365_s8 = int_to_ptr.vmem [resolvable:$true] %s364_s8 }
  0x42   : > { %s2165_s3 = sld [smem:[#allocation52_spill]]  ;;  %p911_p7 = pnand %p2114_p3, %p1743_p13 }
  0x43   : > { %s2166_s6 = sand.u32 1, %s1514_s22   ;;  %s47_s18 = sadd.s32 1, %s1506_s20 }
  0x44   : > { %s1775_s25 = scalar_lea.sflag [#allocation11], %s2166_s6  ;;  %s2246_s18 = smov (!%p1720_p9, %s47_s18), %s1506_s20 }
  0x45   : > { %s60_s4 = sadd.s32 1, %s1486_s15  ;;  %p67_p11 = scmp.ne.s32.totalorder %s1486_s15, %s1482_s14 }
  0x46   : > { %s2167_s16 = sld [smem:[#allocation23_spill]]  ;;  %p49_p13 = scmp.ge.s32.totalorder %s2246_s18, 3 }
  0x47   : > { %p73_p1 = scmp.ne.s32.totalorder %s1482_s14, %s1478_s13  ;;  %p1791_p4 = por %p2113_p0, %p67_p11 }
  0x48   : > { %s360_s30 = scalar_lea.hbm %s2165_s3, %s1502_s19  ;;  %s2248_s18 = smov (%p49_p13, %s2246_s18), 0 }
  0x49   : > { %s362_s2 = sshll.u32 %s360_s30, 4  ;;  %s51_s30 = sadd.s32 1, %s1510_s21  ;;  %s363_s2 = int_to_ptr.hbm [resolvable:$true] %s362_s2 }
  0x4a   : > { %913 = dma.hbm_to_vmem [thread:$0]  (!%p911_p7), %s363_s2, 16, %s365_s8, %s1775_s25  }
  0x4b   : > { %s248_s2 = sadd.s32 1, %s1438_s26  ;;  %2169 = sst [smem:[#allocation42_spill]] %s2248_s18 }
  0x4c   : > { %s2250_s30 = smov (!%p49_p13, %s51_s30), %s1510_s21  ;;  %s2170_s8 = sld [smem:[#allocation22_spill]] }
  0x4d   : > { %p1801_p9 = por %p2112_p10, %p73_p1  ;;  %s1807_s13 = ssub.s32 %s1506_s20, %s2248_s18 }
  0x4e   : > { %p53_p7 = scmp.ge.s32.totalorder %s2250_s30, 2  ;;  %s85_s6 = sor.u32 %s1807_s13, %s1749_s28 }
  0x4f   : > { %s2171_s23 = scalar_select %p1801_p9, 1, 0 }
  0x50   : > { %p86_p11 = scmp.eq.s32.totalorder %s85_s6, 0  ;;  %p192_p13 = scmp.eq.s32.totalorder %s1807_s13, 0 }
  0x51   : > { %2172 = sst [smem:[#allocation43_spill]] %s2171_s23  ;;  %s2252_s30 = smov (%p53_p7, %s2250_s30), 0 }
  0x52   : > { %2173 = sst [smem:[#allocation44_spill]] %s2252_s30  ;;  %s2174_s5 = sadd.s32 1, %s1474_s12 }
  0x53   : > { %s1817_s3 = scalar_select %p86_p11, %s1474_s12, %s2174_s5  }
  0x54   : > { %s55_s9 = ssub.s32 %s1510_s21, %s2252_s30  ;;  %p258_p1 = scmp.ne.s32.totalorder %s1438_s26, %s2167_s16 }
  0x55   : > { %2175 = sst [smem:[#allocation45_spill]] %s1817_s3  ;;  %s57_s18 = sor.u32 %s1749_s28, %s55_s9 }
  0x56   : > { %s245_s10 = sor.u32 %s1807_s13, %s55_s9  ;;  %p58_p10 = scmp.eq.s32.totalorder %s57_s18, 0 }
  0x57   : > { %p246_p0 = scmp.eq.s32.totalorder %s245_s10, 0  ;;  %p1827_p3 = por %p259_p6, %p258_p1 }
  0x58   : > { %p264_p7 = scmp.ne.s32.totalorder %s2167_s16, %s2170_s8  ;;  %s2180_s5 = sadd.s32 4294967294, %s1514_s22  }
  0x59   : > { %s2176_s6 = scalar_select %p1827_p3, 1, 0 }
  0x5a   : > { %s1834_s7 = scalar_select %p58_p10, %s1486_s15, %s60_s4  }
  0x5b   : > { %2177 = sst [smem:[#allocation46_spill]] %s2176_s6  ;;  %p265_p11 = scmp.eq.s32.totalorder %s2180_s5, 17 }
  0x5c   : > { %2178 = sst [smem:[#allocation47_spill]] %s1834_s7  ;;  %s285_s9 = sand.u32 1, %s1486_s15  }
  0x5d   : > { %s1837_s11 = scalar_select %p246_p0, %s1438_s26, %s248_s2  }
  0x5e   : > { %s2181_s28 = sld [smem:[#allocation37_spill]]  ;;  %s862_s18 = sshll.u32 %s285_s9, 3 }
  0x5f   : > { %2179 = sst [smem:[#allocation48_spill]] %s1837_s11  ;;  %p1842_p6 = por %p265_p11, %p264_p7 }
  0x60   : > { %s2182_s30 = sld [smem:[#allocation27_spill]]  ;;  %s883_s4 = smul.u32 3, %s1510_s21 }
  0x61   : > { %s2183_s10 = sld [smem:[#allocation26_spill]]  ;;  %s289_s16 = scalar_lea.vmem [#allocation4], %s862_s18 }
  0x62   : > { %s2184_s3 = scalar_select %p1842_p6, 1, 0 }
  0x63   : > { %s2186_s2 = sld [smem:[#allocation25_spill]]  ;;  %s299_s8 = sshll.u32 %s289_s16, 4  ;;  %s300_s8 = int_to_ptr.vmem [resolvable:$true] %s299_s8 }
  0x64   : > { %2185 = sst [smem:[#allocation37_spill]] %s2184_s3  ;;  %p2187_p0 = scmp.lt.s32.totalorder %s1514_s22, 18 }
  0x65   : > { %s293_s5 = sadd.s32 %s1502_s19, %s883_s4  ;;  %s2188_s11 = sld [smem:[#allocation49_spill]] }
  0x66   : > { %p902_p10 = pnand %p2187_p0, %p1791_p4  ;;  %s863_s7 = sshll.u32 %s293_s5, 3 }
  0x67   : > { %s286_s21 = scalar_lea.sflag [#allocation5], %s285_s9  ;;  %s2189_s18 = smov 8  }
  0x68   : > { %s2190_s16 = smov 128   ;;  %s2191_s6 = smov 384  }
  0x69   : > { %s2192_s27 = int_to_ptr.vmem [resolvable:$true] %s2181_s28  ;;  %s194_s23 = sadd.s32 1, %s2182_s30 }
  0x6a   : > { %910 = dma.hbm_to_vmem [thread:$0]  (!%p1684_p5), %s1708_s1, 2048, %s2192_s27, %s1694_s24, %s2191_s6, %s2190_s16, %s2189_s18  }
  0x6b   : > { %s295_s26 = scalar_lea.hbm %s2188_s11, %s863_s7  ;;  %p201_p4 = scmp.ne.s32.totalorder %s2182_s30, %s2183_s10 }
  0x6c   : > { %s297_s3 = sshll.u32 %s295_s26, 4  ;;  %p2193_p1 = scmp.eq.s32.totalorder %s1514_s22, 0  ;;  %s298_s3 = int_to_ptr.hbm [resolvable:$true] %s297_s3 }
  0x6d   : > { %904 = dma.hbm_to_vmem [thread:$0]  (!%p902_p10), %s298_s3, 128, %s300_s8, %s286_s21  }
  0x6e   : > { %s1870_s4 = scalar_select %p192_p13, %s2182_s30, %s194_s23  }
  0x6f   : > { %p203_p7 = por %p201_p4, %p2193_p1  ;;  %p207_p11 = scmp.ne.s32.totalorder %s2183_s10, %s2186_s2 }
  0x70   : > { %s379_s26 = sand.u32 1, %s2182_s30   ;;  %s2194_s3 = sld [smem:[#allocation54_spill]] }
  0x71   : > { %p2195_p0 = scmp.eq.s32.totalorder %s1717_s29, 0  ;;  %s380_s24 = scalar_lea.vmem [#allocation12], %s379_s26 }
  0x72   : > { %s387_s21 = sshll.u32 %s380_s24, 4  ;;  %p2197_p5 = scmp.lt.s32.totalorder %s1514_s22, 18  ;;  %s388_s21 = int_to_ptr.vmem [resolvable:$true] %s387_s21 }
  0x73   : > { %p1883_p10 = por %p207_p11, %p2195_p0  ;;  %s2198_s13 = sld [smem:[#allocation55_spill]] }
  0x74   : > { %p914_p13 = pnand %p2197_p5, %p203_p7  ;;  %s397_s28 = scalar_lea.vmem [#allocation13], %s379_s26 }
  0x75   : > { %s404_s9 = sshll.u32 %s397_s28, 4  ;;  %s395_s10 = scalar_lea.sflag [#allocation14], %s379_s26  ;;  %s405_s9 = int_to_ptr.vmem [resolvable:$true] %s404_s9 }
  0x76   : > { %s383_s15 = scalar_lea.hbm %s2194_s3, %s1506_s20  ;;  %s415_s8 = sand.u32 (!%p1712_p8), 1, %s1482_s14  }
  0x77   : > { %s385_s1 = sshll.u32 %s383_s15, 4  ;;  %413 = sbr.rel (%p1712_p8) target bundleno = 407 (0x197), region = 48  ;;  %s386_s1 = int_to_ptr.hbm [resolvable:$true] %s385_s1 }
  0x78   : > { %916 = dma.hbm_to_vmem [thread:$0]  (!%p914_p13), %s386_s1, 16, %s388_s21, %s1775_s25  }
  0x79   : > { %s400_s30 = scalar_lea.hbm %s2198_s13, %s1506_s20  ;;  %s1897_s5 = sshll.u32 (!%p1712_p8), %s415_s8, 3 }
  0x7a   : > { %s402_s6 = sshll.u32 %s400_s30, 4  ;;  %s416_s18 = scalar_lea.sflag (!%p1712_p8), [#allocation5], %s415_s8  ;;  %s403_s6 = int_to_ptr.hbm [resolvable:$true] %s402_s6 }
  0x7b   : > { %919 = dma.hbm_to_vmem [thread:$0]  (!%p914_p13), %s403_s6, 16, %s405_s9, %s395_s10  }
  0x7c   : > { %s419_s16 = scalar_lea.vmem [#allocation4], %s1897_s5 }
  0x7d   : > { %1405 = dma.done.wait (%p1801_p9), %s416_s18, 128  }
  0x7e   : > { %1407 = vsyncadd (%p1801_p9), %s416_s18, 4294967168  ;;  %s2200_s25 = sld [smem:[#allocation30_spill]]  ;;  %s425_s26 = sand.u32 1, %s1717_s29  }
  0x7f   : > { %s426_s12 = scalar_lea.sflag [#allocation8], %s425_s26 }
  0x84   : > { %s427_s11 = sand.u32 1, %s2200_s25  }
  0x85   : > { %s874_s0 = sshll.u32 %s427_s11, 7 }
  0x86   : > { %s1906_s3 = scalar_lea.vmem [#allocation7], %s874_s0 }
  0x87   : > { %1409 = dma.done.wait (%p1737_p12), %s426_s12, 4096  }
  0x88   : > { %1411 = vsyncadd (%p1737_p12), %s426_s12, 4294963200  ;;  %s2202_s15 = sld [smem:[#allocation28_spill]]  ;;  %s1913_s21 = scalar_lea.vmem [#allocation9], %s874_s0 }
  0x89   : > { %s446_s7 = scalar_lea.sflag [#allocation11], %s425_s26 }
  0x8e   : > { %s447_s24 = sand.u32 1, %s2202_s15  }
  0x8f   : > { %s1915_s23 = scalar_lea.vmem [#allocation10], %s447_s24 }
  0x90   : > { %1413 = dma.done.wait (%p1757_p2), %s446_s7, 16  }
  0x91   : > { %1415 = vsyncadd (%p1757_p2), %s446_s7, 4294967280  ;;  %s2204_s29 = sld [smem:[#allocation26_spill]] }
  0x97   : > { %s1922_s13 = sand.u32 1, %s2204_s29  }
  0x98   : > { %s457_s30 = scalar_lea.vmem [#allocation12], %s1922_s13 }
  0x99   : > { %1417 = dma.done.wait (%p1883_p10), %s446_s7, 16  }
  0x9a   : > { %1419 = vsyncadd (%p1883_p10), %s446_s7, 4294967280  ;;  %s464_s6 = scalar_lea.sflag [#allocation14], %s1922_s13  ;;  %s466_s28 = scalar_lea.vmem [#allocation13], %s1922_s13 }
  0x9b   : > { %1421 = dma.done.wait (%p1883_p10), %s464_s6, 16  }
  0x9c   : > { %1423 = vsyncadd (%p1883_p10), %s464_s6, 4294967280  ;;  %s2205_s9 = sld [smem:[#allocation23_spill]] }
  0x9d   : > { %s2206_s10 = sld [smem:[#allocation34_spill]] }
  0x9e   : > { %s2207_s27 = sld [smem:[#allocation53_spill]] }
  0x9f   : > { %s2208_s0 = sld [smem:[#allocation33_spill]] }
  0xa2   : > { %s520_s2 = sand.u32 1, %s2205_s9  }
  0xa3   : > { %p525_p8 = scmp.lt.s32.totalorder %s2206_s10, 2  ;;  %s1939_s8 = sshll.u32 %s520_s2, 3 }
  0xa4   : > { %s522_s11 = scalar_lea.vmem [#allocation15], %s1939_s8 }
  0xa5   : > { %s2254_s10 = smov (!%p525_p8, %s2206_s10), 2  ;;  %p877_p12 = scmp.ne.s32.totalorder %s2208_s0, 0 }
  0xa6   : > { %s1945_s26 = scalar_lea.vmem %s2207_s27, %s2254_s10 }
  0xa7   : > { %531 = sbr.rel (%p877_p12) target bundleno = 175 (0xaf), region = 76 }
  0xac   : > { %v1519_v0 = vmov 0.0  }
  0xad   : > { %532 = vst [vmem:[#allocation2] sm:$0xff] %v1519_v0 }
  0xae   : > { %533 = vst [vmem:[#allocation3] sm:$0xff] %v1519_v0 }
  0xaf PF: > { %v550_v1 = vld [vmem:[%s1906_s3 + $0x78] sm:$0xff]  ;;  %v549_v3 = vld [vmem:[%s1906_s3 + $0x70] sm:$0xff]  ;;  %v548_v5 = vld [vmem:[%s1906_s3 + $0x68] sm:$0xff]  ;;  %s2209_s17 = sld [smem:[#allocation33_spill]] }
  0xb0   : > { %v566_v2 = vld [vmem:[%s1913_s21 + $0x78] sm:$0xff]  ;;  %573 = vmatpush.xpose.msra.mxu0 %v550_v1  ;;  %v565_v4 = vld [vmem:[%s1913_s21 + $0x70] sm:$0xff]  ;;  %v564_v6 = vld [vmem:[%s1913_s21 + $0x68] sm:$0xff] }
  0xb1   : > { %596 = vmatpush.xpose.msra.mxu1 %v566_v2  ;;  %v547_v7 = vld [vmem:[%s1906_s3 + $0x60] sm:$0xff]  ;;  %v546_v9 = vld [vmem:[%s1906_s3 + $0x58] sm:$0xff]  ;;  %v545_v11 = vld [vmem:[%s1906_s3 + $0x50] sm:$0xff] }
  0xb2   : > { %v563_v8 = vld [vmem:[%s1913_s21 + $0x60] sm:$0xff]  ;;  %v562_v10 = vld [vmem:[%s1913_s21 + $0x58] sm:$0xff]  ;;  %v561_v12 = vld [vmem:[%s1913_s21 + $0x50] sm:$0xff] }
  0xb3   : > { %v544_v13 = vld [vmem:[%s1906_s3 + $0x48] sm:$0xff]  ;;  %v543_v15 = vld [vmem:[%s1906_s3 + $0x40] sm:$0xff]  ;;  %v542_v17 = vld [vmem:[%s1906_s3 + $0x38] sm:$0xff] }
  0xb4   : > { %574 = vmatpush.xpose.msra.mxu0 %v549_v3  ;;  %v560_v14 = vld [vmem:[%s1913_s21 + $0x48] sm:$0xff]  ;;  %v559_v16 = vld [vmem:[%s1913_s21 + $0x40] sm:$0xff]  ;;  %v558_v18 = vld [vmem:[%s1913_s21 + $0x38] sm:$0xff] }
  0xb5   : > { %597 = vmatpush.xpose.msra.mxu1 %v565_v4  ;;  %v541_v19 = vld [vmem:[%s1906_s3 + $0x30] sm:$0xff]  ;;  %v540_v21 = vld [vmem:[%s1906_s3 + $0x28] sm:$0xff]  ;;  %v539_v23 = vld [vmem:[%s1906_s3 + $0x20] sm:$0xff]  ;;  %p878_p2 = scmp.ne.s32.totalorder %s2209_s17, 2 }
  0xb6   : > { %v557_v20 = vld [vmem:[%s1913_s21 + $0x30] sm:$0xff]  ;;  %v556_v22 = vld [vmem:[%s1913_s21 + $0x28] sm:$0xff]  ;;  %v555_v24 = vld [vmem:[%s1913_s21 + $0x20] sm:$0xff] }
  0xb7   : > { %v538_v25 = vld [vmem:[%s1906_s3 + $0x18] sm:$0xff]  ;;  %v537_v27 = vld [vmem:[%s1906_s3 + $0x10] sm:$0xff]  ;;  %v536_v29 = vld [vmem:[%s1906_s3 + $0x8] sm:$0xff] }
  0xb8   : > { %575 = vmatpush.xpose.msra.mxu0 %v548_v5  ;;  %v554_v26 = vld [vmem:[%s1913_s21 + $0x18] sm:$0xff]  ;;  %v553_v28 = vld [vmem:[%s1913_s21 + $0x10] sm:$0xff]  ;;  %v552_v30 = vld [vmem:[%s1913_s21 + $0x8] sm:$0xff] }
  0xb9   : > { %598 = vmatpush.xpose.msra.mxu1 %v564_v6  ;;  %v1106_v31 = vld [vmem:[%s1915_s23] ss:$0 sm:$0xff]  ;;  %v534_v32 = vld [vmem:[%s419_s16] sm:$0xff]  ;;  %v595_v37 = vld [vmem:[#allocation3] sm:$0xff] }
  0xba   : > { %v535_v33 = vld [vmem:[%s1906_s3] sm:$0xff]  ;;  %v571_v35 = vmul.f32 %v1106_v31, %v534_v32 }
  0xbb   : > { %v551_v34 = vld [vmem:[%s1913_s21] sm:$0xff] }
  0xbc   : > { %576 = vmatpush.xpose.msra.mxu0 %v547_v7  ;;  %v572_v36 = vld [vmem:[#allocation2] sm:$0xff] }
  0xbd   : > { %599 = vmatpush.xpose.msra.mxu1 %v563_v8 }
  0xc0   : > { %577 = vmatpush.xpose.msra.mxu0 %v546_v9 }
  0xc1   : > { %600 = vmatpush.xpose.msra.mxu1 %v562_v10 }
  0xc4   : > { %578 = vmatpush.xpose.msra.mxu0 %v545_v11 }
  0xc5   : > { %601 = vmatpush.xpose.msra.mxu1 %v561_v12 }
  0xc8   : > { %579 = vmatpush.xpose.msra.mxu0 %v544_v13 }
  0xc9   : > { %602 = vmatpush.xpose.msra.mxu1 %v560_v14 }
  0xcc   : > { %580 = vmatpush.xpose.msra.mxu0 %v543_v15 }
  0xcd   : > { %603 = vmatpush.xpose.msra.mxu1 %v559_v16 }
  0xd0   : > { %581 = vmatpush.xpose.msra.mxu0 %v542_v17 }
  0xd1   : > { %604 = vmatpush.xpose.msra.mxu1 %v558_v18 }
  0xd4   : > { %582 = vmatpush.xpose.msra.mxu0 %v541_v19 }
  0xd5   : > { %605 = vmatpush.xpose.msra.mxu1 %v557_v20 }
  0xd8   : > { %583 = vmatpush.xpose.msra.mxu0 %v540_v21 }
  0xd9   : > { %606 = vmatpush.xpose.msra.mxu1 %v556_v22 }
  0xdc   : > { %584 = vmatpush.xpose.msra.mxu0 %v539_v23 }
  0xdd   : > { %607 = vmatpush.xpose.msra.mxu1 %v555_v24 }
  0xe0   : > { %585 = vmatpush.xpose.msra.mxu0 %v538_v25 }
  0xe1   : > { %608 = vmatpush.xpose.msra.mxu1 %v554_v26 }
  0xe4   : > { %586 = vmatpush.xpose.msra.mxu0 %v537_v27 }
  0xe5   : > { %609 = vmatpush.xpose.msra.mxu1 %v553_v28 }
  0xe8   : > { %587 = vmatpush.xpose.msra.mxu0 %v536_v29 }
  0xe9   : > { %610 = vmatpush.xpose.msra.mxu1 %v552_v30 }
  0xec   : > { %588 = vmatpush.xpose.msra.mxu0 %v535_v33 }
  0xed   : > { %611 = vmatpush.xpose.msra.mxu1 %v551_v34 }
  0xef   : > { %589 = vmatmul.f32.vlgmr.msra.gmra.mxu0 %v534_v32 }
  0xf0   : > { %612 = vmatmul.f32.vlgmr.msra.gmra.mxu1 %v571_v35 }
 0x16c   : > { %v590_v38 = vpop.f32.mrf.mxu0  ;;  %621 = sbr.rel (%p878_p2) target bundleno = 383 (0x17f), region = 80 }
 0x16d   : > { %v613_v39 = vpop.f32.mrf.mxu1  ;;  %v593_v40 = vadd.f32 %v590_v38, %v572_v36 }
 0x16e   : > { %v616_v41 = vadd.f32 %v613_v39, %v595_v37 }
 0x16f   : > { %594 = vst [vmem:[#allocation2] sm:$0xff] %v593_v40 }
 0x170   : > { %617 = vst [vmem:[#allocation3] sm:$0xff] %v616_v41 }
 0x171   : > { %v622_v42 = vld [vmem:[%s1945_s26] sm:$0x1] }
 0x172   : > { %v623_v43 = vld [vmem:[%s457_s30] sm:$0x1] }
 0x173   : > { %v624_v44 = vld [vmem:[%s466_s28] sm:$0x1] }
 0x174   : > { %v625_v45 = vmul.f32 %v624_v44, %v622_v42  ;;  %v1107_v47 = vld [vmem:[%s1945_s26] ss:$0 sm:$0xff] }
 0x176   : > { %v627_v48 = vld [vmem:[#allocation2] sm:$0xff]  ;;  %v626_v49 = vadd.f32 %v625_v45, %v623_v43 }
 0x177   : > { %v628_v46 = vld [vmem:[#allocation3] sm:$0xff] }
 0x178   : > { %v632_v50 = vmul.f32 %v1107_v47, %v628_v46  ;;  %v635_v52 = vperm.slane %v626_v49, 0 }
 0x17a   : > { %v633_v51 = vadd.f32 %v632_v50, %v627_v48 }
 0x17c   : > { %v637_v53 = vadd.f32 %v635_v52, %v633_v51 }
 0x17e   : > { %638 = vst [vmem:[%s522_s11] sm:$0xff] %v637_v53 }
 0x17f PF: > { %s2210_s5 = sld [smem:[#allocation35_spill]]  ;;  %s654_s1 = sshll.u32 %s522_s11, 4  ;;  %s655_s1 = int_to_ptr.vmem [resolvable:$true] %s654_s1 }
 0x180   : > { %s2211_s16 = sld [smem:[#allocation34_spill]]  ;;  %s640_s28 = scalar_lea.sflag [#allocation6], %s520_s2 }
 0x181   : > { %s2214_s29 = sld [smem:[#allocation56_spill]] }
 0x185   : > { %s886_s15 = smul.u32 3, %s2210_s5 }
 0x187   : > { %s650_s24 = sadd.s32 %s2211_s16, %s886_s15  ;;  %s2215_s6 = smov %s2214_s29 }
 0x188   : > { %s880_s21 = sshll.u32 %s650_s24, 3  ;;  %s1308_s25 = scalar_lea.hbm %s2215_s6, 48 }
 0x189   : > { %s652_s13 = scalar_lea.hbm %s2214_s29, %s880_s21 }
 0x18a   : > { %s656_s30 = sshll.u32 %s652_s13, 4  ;;  %s657_s30 = int_to_ptr.hbm [resolvable:$true] %s656_s30 }
 0x18b   : > { %s1302_s9 = sshra.s32 %s657_s30, 4  ;;  %s1303_s9 = int_to_ptr.hbm [resolvable:$true] %s1302_s9 }
 0x18c   : > { %s1304_s10 = scalar_lea.hbm %s1303_s9, 8  ;;  %p1309_p7 = scmp.lt.s32.totalorder %s1303_s9, %s2215_s6 }
 0x18d   : > { %p1305_p9 = scmp.ne.s32.totalorder %s1303_s9, %s1304_s10  ;;  %p1310_p11 = scmp.lt.s32.totalorder %s1308_s25, %s1304_s10 }
 0x18f   : > { %p1306_p4 = pnand %p1305_p9, %p1827_p3  ;;  %p1311_p0 = por %p1310_p11, %p1309_p7 }
 0x191   : > { %p1307_p1 = pneg %p1306_p4 }
 0x193   : > { %p1312_p10 = pnand %p1311_p0, %p1307_p1 }
 0x195   : > { %1315 = shalt.err (!%p1312_p10)
}
 0x196   : > { %899 = dma.vmem_to_hbm [thread:$0]  (%p1827_p3), %s655_s1, 128, %s657_s30, %s640_s28  }
 0x197 PF: > { %s2216_s2 = sld [smem:[#allocation22_spill]]  ;;  %p925_p5 = scmp.ge.s32.totalorder %s1514_s22, 2 }
 0x199   : > { %p921_p13 = pnand %p925_p5, %p1842_p6 }
 0x19b   : > { %p922_p8 = pneg %p921_p13 }
 0x19d   : > { %s668_s0 = sand.u32 1, %s2216_s2  }
 0x19e   : > { %s669_s17 = scalar_lea.sflag [#allocation6], %s668_s0 }
 0x19f   : > { %1425 = dma.done.wait (%p922_p8), %s669_s17, 128  }
 0x1a0   : > { %1427 = vsyncadd (%p922_p8), %s669_s17, 4294967168  ;;  %s32_s22 = sadd.s32 1, %s1514_s22   ;;  %s2219_s24 = sld [smem:[#allocation23_spill]] }
 0x1a1   : > { %p2017_p12 = scmp.ge.s32.totalorder %s32_s22, 20   ;;  %s2220_s25 = sld [smem:[#allocation24_spill]] }
 0x1a2   : > { %s2221_s26 = sld [smem:[#allocation48_spill]]  ;;  %s2236_s29 = smov %s1870_s4 }
 0x1a3   : > { %s2222_s27 = sld [smem:[#allocation26_spill]]  ;;  %s2237_s13 = smov %s1482_s14 }
 0x1a4   : > { %s2223_s28 = sld [smem:[#allocation27_spill]]  ;;  %s2240_s17 = smov %s1506_s20 }
 0x1a5   : > { %s2224_s30 = sld [smem:[#allocation28_spill]] }
 0x1a6   : > { %s2225_s8 = sld [smem:[#allocation29_spill]] }
 0x1a7   : > { %s2226_s9 = sld [smem:[#allocation41_spill]] }
 0x1a8   : > { %s2227_s10 = sld [smem:[#allocation30_spill]] }
 0x1a9   : > { %s2228_s11 = sld [smem:[#allocation31_spill]] }
 0x1aa   : > { %s2229_s12 = sld [smem:[#allocation45_spill]] }
 0x1ab   : > { %s2230_s16 = sld [smem:[#allocation32_spill]] }
 0x1ac   : > { %s2231_s15 = sld [smem:[#allocation47_spill]] }
 0x1ad   : > { %s2232_s18 = sld [smem:[#allocation36_spill]] }
 0x1ae   : > { %s2233_s3 = sld [smem:[#allocation38_spill]] }
 0x1af   : > { %s2234_s1 = sld [smem:[#allocation42_spill]] }
 0x1b0   : > { %s2235_s21 = sld [smem:[#allocation44_spill]] }
 0x1b1   : > { %s2238_s14 = smov %s2230_s16  ;;  %s2239_s16 = smov %s1502_s19 }
 0x1b2   :  { %31 = sbr.rel (!%p2017_p12) target bundleno = 29 (0x1d), region = 165 }
 0x1b4   : > { %s2241_s19 = smov %s2233_s3 }
 0x1b5   : > { %s2242_s20 = smov %s2234_s1 }
 0x1b7   :  { %675 = vsyncpa [#allocation5], 1 }
 0x1b8   :  { %677 = vsyncpa [#allocation5 + $0x1], 1 }
 0x1b9   :  { %678 = vsyncpa [#allocation8], 1 }
 0x1ba   :  { %680 = vsyncpa [#allocation8 + $0x1], 1 }
 0x1bb   :  { %681 = vsyncpa [#allocation11], 1 }
 0x1bc   :  { %683 = vsyncpa [#allocation11 + $0x1], 1 }
 0x1bd   :  { %684 = vsyncpa [#allocation14], 1 }
 0x1be   :  { %686 = vsyncpa [#allocation14 + $0x1], 1 }
 0x1bf   :  { %687 = vsyncpa [#allocation6], 1 }
 0x1c0   :  { %689 = vsyncpa [#allocation6 + $0x1], 1 }

</bundles_post_ra>
